<compile_context>
chip_gen: v5e
topology: v5e:2x2
jax: 0.10.0
libtpu: 0.0.40
codegen_flags: <defaults>
</compile_context>

<pallas_src>
import jax
import jax.numpy as jnp
from jax import lax
from jax.experimental import pallas as pl
from jax.experimental.pallas import tpu as pltpu

EPS = 1e-5  # PyTorch BatchNorm1d default eps


def ncc_kernel(xy_ref, w1p_ref, b1p_ref, w2p_ref, b2p_ref,
               wd0p_ref, wds_ref, tds_ref, wl_ref, bl_ref,
               logits_ref, prob_ref):
    f32 = jnp.float32

    # ---- embedding trunk, lane-packed as (Bb, D*E) ----
    h = jnp.dot(xy_ref[...], w1p_ref[...], preferred_element_type=f32)
    h = jnp.maximum(h + b1p_ref[...], 0.0)

    w2p = w2p_ref[...]                      # (D*E, D*E) block-diag, BN folded
    b2p = b2p_ref[...]
    for _ in range(3):                      # shared e1Linear2 / e1BatchNorm2
        h = jnp.dot(h, w2p, preferred_element_type=f32)
        h = jnp.maximum(h + b2p, 0.0)

    # ---- deepclass applied twice (shared weights); the mean over D is folded
    #      into the first weight of the first pass (wd0p) ----
    wd = [wds_ref[i] for i in range(4)]     # hoisted static slices (C, C)
    td = [tds_ref[i] for i in range(4)]     # (1, C)

    z = jnp.dot(h, wd0p_ref[...], preferred_element_type=f32)   # pooled layer 0
    z = jnp.maximum(z + td[0], 0.0)
    for i in range(1, 4):
        z = jnp.dot(z, wd[i], preferred_element_type=f32)
        z = jnp.maximum(z + td[i], 0.0)
    for i in range(4):                      # second application of deepclass
        z = jnp.dot(z, wd[i], preferred_element_type=f32)
        z = jnp.maximum(z + td[i], 0.0)

    # ---- logits head, written lane-dense as (1, Bb) ----
    logits = lax.dot_general(wl_ref[...], z, (((1,), (1,)), ((), ())),
                             preferred_element_type=f32) + bl_ref[...]
    logits_ref[...] = logits
    prob_ref[...] = jax.nn.sigmoid(logits)


def _choose_blocking(B, block_b):
    """Pick (Bb, B_pad, n_blocks). Prefers an even number of >=2 blocks for v7x."""
    if B <= 128:
        return B, B, 1
    assert block_b % 128 == 0, "block_b must be a multiple of 128"
    n_units = pl.cdiv(B, 128)               # 128-row units
    bu = max(1, min(block_b // 128, n_units))
    n_blocks = pl.cdiv(n_units, bu)
    if n_blocks % 2 == 1 and n_units >= 2:  # rebalance to an even block count
        bu = pl.cdiv(n_units, n_blocks + 1)
        n_blocks = pl.cdiv(n_units, bu)
    Bb = bu * 128
    return Bb, n_blocks * Bb, n_blocks


def ncc_forward(xVal, yVal, p, block_b=1024):
    B, D, _ = xVal.shape
    E = p["w1"].shape[1]
    C = p["wd"].shape[1]
    DE = D * E

    Bb, B_pad, n_blocks = _choose_blocking(B, block_b)

    # Pack x/y into one dense (B_pad, 2D) array: x in cols 0:D, y in D:2D.
    xy = jnp.concatenate([xVal[..., 0], yVal[..., 0]], axis=1)
    if B_pad != B:
        xy = jnp.pad(xy, ((0, B_pad - B), (0, 0)))

    # Fold eval-mode BatchNorm1d through the `.view(B, E, D)` reinterpretation:
    # element (b, d, e) of the (B, D, E) linear output lands in BN channel
    # c = (d*E + e) // D of the reshaped (B, E, D) view.  Also fold the Linear
    # bias into the shift.  Results are batch-invariant, flattened to (DE,).
    def fold_view_bn(gamma, beta, rm, rv, lin_bias):
        sc = gamma / jnp.sqrt(rv + EPS)
        sh = beta - rm * sc
        d = jnp.arange(D)[:, None]
        e = jnp.arange(E)[None, :]
        c = (d * E + e) // D
        s = sc[c]                               # (D, E)
        t = sh[c] + lin_bias[None, :] * s       # (D, E)
        return s.reshape(DE), t.reshape(DE)

    s1f, t1f = fold_view_bn(p["g1"], p["be1"], p["rm1"], p["rv1"], p["b1"])
    s2f, t2f = fold_view_bn(p["g2"], p["be2"], p["rm2"], p["rv2"], p["b2"])

    eyeD = jnp.eye(D, dtype=jnp.float32)
    # Packed layer-1 weight: W1p[d, d*E+e] = w1[0,e], W1p[D+d, d*E+e] = w1[1,e]
    w1p = jnp.concatenate([jnp.kron(eyeD, p["w1"][0:1, :]),
                           jnp.kron(eyeD, p["w1"][1:2, :])], axis=0)  # (2D, DE)
    w1p = w1p * s1f[None, :]
    b1p = t1f.reshape(1, DE)

    # Block-diagonal shared trunk weight with BN scale folded into columns.
    w2p = jnp.kron(eyeD, p["w2"]) * s2f[None, :]                       # (DE, DE)
    b2p = t2f.reshape(1, DE)

    # deepclass BN (plain 2-D): fold scale into weights, shift+bias into rows.
    sd = p["gd"] / jnp.sqrt(p["rvd"] + EPS)                            # (4, C)
    td = p["bed"] - p["rmd"] * sd + p["bd"] * sd                       # (4, C)
    wds = p["wd"] * sd[:, None, :]                                     # (4, C, C)
    # Fold torch.mean over D into the first deepclass weight (first pass only).
    pool = jnp.tile(jnp.eye(E, dtype=jnp.float32), (D, 1)) / D         # (DE, E)
    wd0p = pool @ wds[0]                                               # (DE, C)

    def resident(shape):
        return pl.BlockSpec(shape, lambda i, s=shape: (0,) * len(s))

    in_specs = [
        pl.BlockSpec((Bb, 2 * D), lambda i: (i, 0)),    # xy (streamed)
        resident((2 * D, DE)),                          # w1p
        resident((1, DE)),                              # b1p
        resident((DE, DE)),                             # w2p
        resident((1, DE)),                              # b2p
        resident((DE, C)),                              # wd0p
        resident((4, C, C)),                            # wds
        resident((4, 1, C)),                            # tds
        resident((1, C)),                               # wl
        resident((1, 1)),                               # bl
    ]
    out_specs = (pl.BlockSpec((1, Bb), lambda i: (0, i)),
                 pl.BlockSpec((1, Bb), lambda i: (0, i)))
    out_shape = (jax.ShapeDtypeStruct((1, B_pad), jnp.float32),
                 jax.ShapeDtypeStruct((1, B_pad), jnp.float32))

    fn = pl.pallas_call(
        ncc_kernel,
        grid=(n_blocks,),
        in_specs=in_specs,
        out_specs=out_specs,
        out_shape=out_shape,
        compiler_params=pltpu.CompilerParams(
            dimension_semantics=("parallel",)),
    )
    logits_row, prob_row = fn(
        xy,
        w1p, b1p, w2p, b2p,
        wd0p, wds, td.reshape(4, 1, C),
        p["wl"].reshape(1, C), p["bl"].reshape(1, 1))
    logits = logits_row[0, :B].reshape(B, 1)
    prob = prob_row[0, :B].reshape(B, 1)
    return logits, prob


def ncc_reference(xVal, yVal, p):
    """Pure-JAX mirror of the PyTorch forward (eval mode), incl. the .view trick."""
    xy = jnp.concatenate([xVal, yVal], axis=2)
    B, D, _ = xy.shape
    E = p["w1"].shape[1]

    def emb_layer(x, W, b, g, be, rm, rv):
        h = x @ W + b                                   # (B, D, E)
        h = h.reshape(B, E, D)                          # .view(B, E, D)
        h = (h - rm[None, :, None]) / jnp.sqrt(rv[None, :, None] + EPS)
        h = h * g[None, :, None] + be[None, :, None]
        h = h.reshape(B, D, E)                          # .view(B, D, E)
        return jnp.maximum(h, 0.0)

    h = emb_layer(xy, p["w1"], p["b1"], p["g1"], p["be1"], p["rm1"], p["rv1"])
    for _ in range(3):
        h = emb_layer(h, p["w2"], p["b2"], p["g2"], p["be2"], p["rm2"], p["rv2"])
    emb = h.mean(axis=1)
    z = emb
    for _ in range(2):
        for i in range(4):
            z = z @ p["wd"][i] + p["bd"][i]
            z = (z - p["rmd"][i]) / jnp.sqrt(p["rvd"][i] + EPS)
            z = z * p["gd"][i] + p["bed"][i]
            z = jnp.maximum(z, 0.0)
    logits = z @ p["wl"] + p["bl"]
    return logits, jax.nn.sigmoid(logits)


if __name__ == "__main__":
    # small shapes: D=8 points per sample, sizeEmbLayer=sizeClassfLayer=32
    D, E = 8, 32
    C = E
    key = jax.random.PRNGKey(0)
    ks = jax.random.split(key, 22)
    nrm = lambda k, s, sc=0.3: sc * jax.random.normal(k, s, dtype=jnp.float32)

    params = dict(
        # e1Linear1 / e1BatchNorm1
        w1=nrm(ks[0], (2, E)), b1=nrm(ks[1], (E,)),
        g1=1.0 + nrm(ks[2], (E,), 0.1), be1=nrm(ks[3], (E,), 0.1),
        rm1=nrm(ks[4], (E,), 0.1),
        rv1=0.5 + jax.random.uniform(ks[5], (E,), dtype=jnp.float32),
        # e1Linear2 / e1BatchNorm2 (shared across layers 2..4)
        w2=nrm(ks[6], (E, E)), b2=nrm(ks[7], (E,)),
        g2=1.0 + nrm(ks[8], (E,), 0.1), be2=nrm(ks[9], (E,), 0.1),
        rm2=nrm(ks[10], (E,), 0.1),
        rv2=0.5 + jax.random.uniform(ks[11], (E,), dtype=jnp.float32),
        # deepclass: 4 Linear(C,C) + BN(C) blocks, applied twice
        wd=nrm(ks[12], (4, C, C)), bd=nrm(ks[13], (4, C)),
        gd=1.0 + nrm(ks[14], (4, C), 0.1), bed=nrm(ks[15], (4, C), 0.1),
        rmd=nrm(ks[16], (4, C), 0.1),
        rvd=0.5 + jax.random.uniform(ks[17], (4, C), dtype=jnp.float32),
        # logits head
        wl=nrm(ks[18], (C, 1)), bl=nrm(ks[19], (1,)),
    )

    # Case 1: tiny batch (single block).  Case 2: grid + padding + even-block
    # rebalance.  Case 3: exact multi-block fit (2 x 512).
    for B, blk in ((2, 1024), (300, 1024), (1024, 512)):
        kx = jax.random.fold_in(ks[20], B)
        ky = jax.random.fold_in(ks[21], B)
        xVal = jax.random.normal(kx, (B, D, 1), dtype=jnp.float32)
        yVal = jax.random.normal(ky, (B, D, 1), dtype=jnp.float32)

        logits, prob = jax.block_until_ready(
            ncc_forward(xVal, yVal, params, block_b=blk))
        ref_logits, ref_prob = ncc_reference(xVal, yVal, params)
        assert logits.shape == (B, 1) and prob.shape == (B, 1)
        assert jnp.allclose(logits, ref_logits, atol=2e-4, rtol=2e-4), (
            "logits mismatch", float(jnp.max(jnp.abs(logits - ref_logits))))
        assert jnp.allclose(prob, ref_prob, atol=2e-4, rtol=2e-4), (
            "prob mismatch", float(jnp.max(jnp.abs(prob - ref_prob))))
    print("KERNEL_OK")
</pallas_src>

<mosaic_0001>
module attributes {stable_mosaic.version = 11 : i64} {
  func.func @ncc_kernel(%arg0: i32, %arg1: memref<2x16xf32, #tpu.memory_space<vmem>>, %arg2: memref<16x256xf32, #tpu.memory_space<vmem>>, %arg3: memref<1x256xf32, #tpu.memory_space<vmem>>, %arg4: memref<256x256xf32, #tpu.memory_space<vmem>>, %arg5: memref<1x256xf32, #tpu.memory_space<vmem>>, %arg6: memref<256x32xf32, #tpu.memory_space<vmem>>, %arg7: memref<4x32x32xf32, #tpu.memory_space<vmem>>, %arg8: memref<4x1x32xf32, #tpu.memory_space<vmem>>, %arg9: memref<1x32xf32, #tpu.memory_space<vmem>>, %arg10: memref<1x1xf32, #tpu.memory_space<vmem>>, %arg11: memref<1x2xf32, #tpu.memory_space<vmem>>, %arg12: memref<1x2xf32, #tpu.memory_space<vmem>>) attributes {dimension_semantics = [#tpu.dimension_semantics<parallel>], iteration_bounds = array<i64: 1>, scalar_prefetch = 0 : i64, scratch_operands = 0 : i64, tpu.core_type = #tpu.core_type<tc>, window_params = [{transform_indices = @transform_0, window_bounds = array<i64: 2, 16>}, {pipeline_mode = #tpu.pipeline_mode<synchronous>, transform_indices = @transform_1, window_bounds = array<i64: 16, 256>}, {pipeline_mode = #tpu.pipeline_mode<synchronous>, transform_indices = @transform_2, window_bounds = array<i64: 1, 256>}, {pipeline_mode = #tpu.pipeline_mode<synchronous>, transform_indices = @transform_3, window_bounds = array<i64: 256, 256>}, {pipeline_mode = #tpu.pipeline_mode<synchronous>, transform_indices = @transform_4, window_bounds = array<i64: 1, 256>}, {pipeline_mode = #tpu.pipeline_mode<synchronous>, transform_indices = @transform_5, window_bounds = array<i64: 256, 32>}, {pipeline_mode = #tpu.pipeline_mode<synchronous>, transform_indices = @transform_6, window_bounds = array<i64: 4, 32, 32>}, {pipeline_mode = #tpu.pipeline_mode<synchronous>, transform_indices = @transform_7, window_bounds = array<i64: 4, 1, 32>}, {pipeline_mode = #tpu.pipeline_mode<synchronous>, transform_indices = @transform_8, window_bounds = array<i64: 1, 32>}, {pipeline_mode = #tpu.pipeline_mode<synchronous>, transform_indices = @transform_9, window_bounds = array<i64: 1, 1>}, {transform_indices = @transform_10, window_bounds = array<i64: 1, 2>}, {transform_indices = @transform_11, window_bounds = array<i64: 1, 2>}]} {
    %c0 = arith.constant 0 : index
    %c0_0 = arith.constant 0 : index
    %0 = vector.load %arg1[%c0, %c0_0] : memref<2x16xf32, #tpu.memory_space<vmem>>, vector<2x16xf32>
    %c0_1 = arith.constant 0 : index
    %c0_2 = arith.constant 0 : index
    %1 = vector.load %arg2[%c0_1, %c0_2] : memref<16x256xf32, #tpu.memory_space<vmem>>, vector<16x256xf32>
    %cst = arith.constant dense<0.000000e+00> : vector<2x256xf32>
    %2 = tpu.matmul %0, %1, %cst {dimension_numbers = #tpu.dot_dimension_numbers<[1], [0], [0], [1], [0, 0, 1, 1], [], []>} : vector<2x16xf32>, vector<16x256xf32>, vector<2x256xf32> -> vector<2x256xf32>
    %c0_3 = arith.constant 0 : index
    %c0_4 = arith.constant 0 : index
    %3 = vector.load %arg3[%c0_3, %c0_4] : memref<1x256xf32, #tpu.memory_space<vmem>>, vector<1x256xf32>
    %4 = vector.broadcast %3 : vector<1x256xf32> to vector<2x256xf32>
    %5 = arith.addf %2, %4 : vector<2x256xf32>
    %cst_5 = arith.constant 0.000000e+00 : f32
    %6 = vector.broadcast %cst_5 : f32 to vector<2x256xf32>
    %7 = arith.maximumf %5, %6 : vector<2x256xf32>
    %c0_6 = arith.constant 0 : index
    %c0_7 = arith.constant 0 : index
    %8 = vector.load %arg4[%c0_6, %c0_7] : memref<256x256xf32, #tpu.memory_space<vmem>>, vector<256x256xf32>
    %c0_8 = arith.constant 0 : index
    %c0_9 = arith.constant 0 : index
    %9 = vector.load %arg5[%c0_8, %c0_9] : memref<1x256xf32, #tpu.memory_space<vmem>>, vector<1x256xf32>
    %cst_10 = arith.constant dense<0.000000e+00> : vector<2x256xf32>
    %10 = tpu.matmul %7, %8, %cst_10 {dimension_numbers = #tpu.dot_dimension_numbers<[1], [0], [0], [1], [0, 0, 1, 1], [], []>} : vector<2x256xf32>, vector<256x256xf32>, vector<2x256xf32> -> vector<2x256xf32>
    %11 = vector.broadcast %9 : vector<1x256xf32> to vector<2x256xf32>
    %12 = arith.addf %10, %11 : vector<2x256xf32>
    %cst_11 = arith.constant 0.000000e+00 : f32
    %13 = vector.broadcast %cst_11 : f32 to vector<2x256xf32>
    %14 = arith.maximumf %12, %13 : vector<2x256xf32>
    %cst_12 = arith.constant dense<0.000000e+00> : vector<2x256xf32>
    %15 = tpu.matmul %14, %8, %cst_12 {dimension_numbers = #tpu.dot_dimension_numbers<[1], [0], [0], [1], [0, 0, 1, 1], [], []>} : vector<2x256xf32>, vector<256x256xf32>, vector<2x256xf32> -> vector<2x256xf32>
    %16 = vector.broadcast %9 : vector<1x256xf32> to vector<2x256xf32>
    %17 = arith.addf %15, %16 : vector<2x256xf32>
    %cst_13 = arith.constant 0.000000e+00 : f32
    %18 = vector.broadcast %cst_13 : f32 to vector<2x256xf32>
    %19 = arith.maximumf %17, %18 : vector<2x256xf32>
    %cst_14 = arith.constant dense<0.000000e+00> : vector<2x256xf32>
    %20 = tpu.matmul %19, %8, %cst_14 {dimension_numbers = #tpu.dot_dimension_numbers<[1], [0], [0], [1], [0, 0, 1, 1], [], []>} : vector<2x256xf32>, vector<256x256xf32>, vector<2x256xf32> -> vector<2x256xf32>
    %21 = vector.broadcast %9 : vector<1x256xf32> to vector<2x256xf32>
    %22 = arith.addf %20, %21 : vector<2x256xf32>
    %cst_15 = arith.constant 0.000000e+00 : f32
    %23 = vector.broadcast %cst_15 : f32 to vector<2x256xf32>
    %24 = arith.maximumf %22, %23 : vector<2x256xf32>
    %c0_16 = arith.constant 0 : index
    %c0_17 = arith.constant 0 : index
    %c0_18 = arith.constant 0 : index
    %25 = vector.load %arg7[%c0_16, %c0_17, %c0_18] : memref<4x32x32xf32, #tpu.memory_space<vmem>>, vector<1x32x32xf32>
    %26 = vector.shape_cast %25 : vector<1x32x32xf32> to vector<32x32xf32>
    %c1 = arith.constant 1 : index
    %c0_19 = arith.constant 0 : index
    %c0_20 = arith.constant 0 : index
    %27 = vector.load %arg7[%c1, %c0_19, %c0_20] : memref<4x32x32xf32, #tpu.memory_space<vmem>>, vector<1x32x32xf32>
    %28 = vector.shape_cast %27 : vector<1x32x32xf32> to vector<32x32xf32>
    %c2 = arith.constant 2 : index
    %c0_21 = arith.constant 0 : index
    %c0_22 = arith.constant 0 : index
    %29 = vector.load %arg7[%c2, %c0_21, %c0_22] : memref<4x32x32xf32, #tpu.memory_space<vmem>>, vector<1x32x32xf32>
    %30 = vector.shape_cast %29 : vector<1x32x32xf32> to vector<32x32xf32>
    %c3 = arith.constant 3 : index
    %c0_23 = arith.constant 0 : index
    %c0_24 = arith.constant 0 : index
    %31 = vector.load %arg7[%c3, %c0_23, %c0_24] : memref<4x32x32xf32, #tpu.memory_space<vmem>>, vector<1x32x32xf32>
    %32 = vector.shape_cast %31 : vector<1x32x32xf32> to vector<32x32xf32>
    %c0_25 = arith.constant 0 : index
    %c0_26 = arith.constant 0 : index
    %c0_27 = arith.constant 0 : index
    %33 = vector.load %arg8[%c0_25, %c0_26, %c0_27] : memref<4x1x32xf32, #tpu.memory_space<vmem>>, vector<1x1x32xf32>
    %34 = vector.shape_cast %33 : vector<1x1x32xf32> to vector<1x32xf32>
    %c1_28 = arith.constant 1 : index
    %c0_29 = arith.constant 0 : index
    %c0_30 = arith.constant 0 : index
    %35 = vector.load %arg8[%c1_28, %c0_29, %c0_30] : memref<4x1x32xf32, #tpu.memory_space<vmem>>, vector<1x1x32xf32>
    %36 = vector.shape_cast %35 : vector<1x1x32xf32> to vector<1x32xf32>
    %c2_31 = arith.constant 2 : index
    %c0_32 = arith.constant 0 : index
    %c0_33 = arith.constant 0 : index
    %37 = vector.load %arg8[%c2_31, %c0_32, %c0_33] : memref<4x1x32xf32, #tpu.memory_space<vmem>>, vector<1x1x32xf32>
    %38 = vector.shape_cast %37 : vector<1x1x32xf32> to vector<1x32xf32>
    %c3_34 = arith.constant 3 : index
    %c0_35 = arith.constant 0 : index
    %c0_36 = arith.constant 0 : index
    %39 = vector.load %arg8[%c3_34, %c0_35, %c0_36] : memref<4x1x32xf32, #tpu.memory_space<vmem>>, vector<1x1x32xf32>
    %40 = vector.shape_cast %39 : vector<1x1x32xf32> to vector<1x32xf32>
    %c0_37 = arith.constant 0 : index
    %c0_38 = arith.constant 0 : index
    %41 = vector.load %arg6[%c0_37, %c0_38] : memref<256x32xf32, #tpu.memory_space<vmem>>, vector<256x32xf32>
    %cst_39 = arith.constant dense<0.000000e+00> : vector<2x32xf32>
    %42 = tpu.matmul %24, %41, %cst_39 {dimension_numbers = #tpu.dot_dimension_numbers<[1], [0], [0], [1], [0, 0, 1, 1], [], []>} : vector<2x256xf32>, vector<256x32xf32>, vector<2x32xf32> -> vector<2x32xf32>
    %43 = vector.broadcast %34 : vector<1x32xf32> to vector<2x32xf32>
    %44 = arith.addf %42, %43 : vector<2x32xf32>
    %cst_40 = arith.constant 0.000000e+00 : f32
    %45 = vector.broadcast %cst_40 : f32 to vector<2x32xf32>
    %46 = arith.maximumf %44, %45 : vector<2x32xf32>
    %cst_41 = arith.constant dense<0.000000e+00> : vector<2x32xf32>
    %47 = tpu.matmul %46, %28, %cst_41 {dimension_numbers = #tpu.dot_dimension_numbers<[1], [0], [0], [1], [0, 0, 1, 1], [], []>} : vector<2x32xf32>, vector<32x32xf32>, vector<2x32xf32> -> vector<2x32xf32>
    %48 = vector.broadcast %36 : vector<1x32xf32> to vector<2x32xf32>
    %49 = arith.addf %47, %48 : vector<2x32xf32>
    %cst_42 = arith.constant 0.000000e+00 : f32
    %50 = vector.broadcast %cst_42 : f32 to vector<2x32xf32>
    %51 = arith.maximumf %49, %50 : vector<2x32xf32>
    %cst_43 = arith.constant dense<0.000000e+00> : vector<2x32xf32>
    %52 = tpu.matmul %51, %30, %cst_43 {dimension_numbers = #tpu.dot_dimension_numbers<[1], [0], [0], [1], [0, 0, 1, 1], [], []>} : vector<2x32xf32>, vector<32x32xf32>, vector<2x32xf32> -> vector<2x32xf32>
    %53 = vector.broadcast %38 : vector<1x32xf32> to vector<2x32xf32>
    %54 = arith.addf %52, %53 : vector<2x32xf32>
    %cst_44 = arith.constant 0.000000e+00 : f32
    %55 = vector.broadcast %cst_44 : f32 to vector<2x32xf32>
    %56 = arith.maximumf %54, %55 : vector<2x32xf32>
    %cst_45 = arith.constant dense<0.000000e+00> : vector<2x32xf32>
    %57 = tpu.matmul %56, %32, %cst_45 {dimension_numbers = #tpu.dot_dimension_numbers<[1], [0], [0], [1], [0, 0, 1, 1], [], []>} : vector<2x32xf32>, vector<32x32xf32>, vector<2x32xf32> -> vector<2x32xf32>
    %58 = vector.broadcast %40 : vector<1x32xf32> to vector<2x32xf32>
    %59 = arith.addf %57, %58 : vector<2x32xf32>
    %cst_46 = arith.constant 0.000000e+00 : f32
    %60 = vector.broadcast %cst_46 : f32 to vector<2x32xf32>
    %61 = arith.maximumf %59, %60 : vector<2x32xf32>
    %cst_47 = arith.constant dense<0.000000e+00> : vector<2x32xf32>
    %62 = tpu.matmul %61, %26, %cst_47 {dimension_numbers = #tpu.dot_dimension_numbers<[1], [0], [0], [1], [0, 0, 1, 1], [], []>} : vector<2x32xf32>, vector<32x32xf32>, vector<2x32xf32> -> vector<2x32xf32>
    %63 = vector.broadcast %34 : vector<1x32xf32> to vector<2x32xf32>
    %64 = arith.addf %62, %63 : vector<2x32xf32>
    %cst_48 = arith.constant 0.000000e+00 : f32
    %65 = vector.broadcast %cst_48 : f32 to vector<2x32xf32>
    %66 = arith.maximumf %64, %65 : vector<2x32xf32>
    %cst_49 = arith.constant dense<0.000000e+00> : vector<2x32xf32>
    %67 = tpu.matmul %66, %28, %cst_49 {dimension_numbers = #tpu.dot_dimension_numbers<[1], [0], [0], [1], [0, 0, 1, 1], [], []>} : vector<2x32xf32>, vector<32x32xf32>, vector<2x32xf32> -> vector<2x32xf32>
    %68 = vector.broadcast %36 : vector<1x32xf32> to vector<2x32xf32>
    %69 = arith.addf %67, %68 : vector<2x32xf32>
    %cst_50 = arith.constant 0.000000e+00 : f32
    %70 = vector.broadcast %cst_50 : f32 to vector<2x32xf32>
    %71 = arith.maximumf %69, %70 : vector<2x32xf32>
    %cst_51 = arith.constant dense<0.000000e+00> : vector<2x32xf32>
    %72 = tpu.matmul %71, %30, %cst_51 {dimension_numbers = #tpu.dot_dimension_numbers<[1], [0], [0], [1], [0, 0, 1, 1], [], []>} : vector<2x32xf32>, vector<32x32xf32>, vector<2x32xf32> -> vector<2x32xf32>
    %73 = vector.broadcast %38 : vector<1x32xf32> to vector<2x32xf32>
    %74 = arith.addf %72, %73 : vector<2x32xf32>
    %cst_52 = arith.constant 0.000000e+00 : f32
    %75 = vector.broadcast %cst_52 : f32 to vector<2x32xf32>
    %76 = arith.maximumf %74, %75 : vector<2x32xf32>
    %cst_53 = arith.constant dense<0.000000e+00> : vector<2x32xf32>
    %77 = tpu.matmul %76, %32, %cst_53 {dimension_numbers = #tpu.dot_dimension_numbers<[1], [0], [0], [1], [0, 0, 1, 1], [], []>} : vector<2x32xf32>, vector<32x32xf32>, vector<2x32xf32> -> vector<2x32xf32>
    %78 = vector.broadcast %40 : vector<1x32xf32> to vector<2x32xf32>
    %79 = arith.addf %77, %78 : vector<2x32xf32>
    %cst_54 = arith.constant 0.000000e+00 : f32
    %80 = vector.broadcast %cst_54 : f32 to vector<2x32xf32>
    %81 = arith.maximumf %79, %80 : vector<2x32xf32>
    %c0_55 = arith.constant 0 : index
    %c0_56 = arith.constant 0 : index
    %82 = vector.load %arg9[%c0_55, %c0_56] : memref<1x32xf32, #tpu.memory_space<vmem>>, vector<1x32xf32>
    %cst_57 = arith.constant dense<0.000000e+00> : vector<1x2xf32>
    %83 = tpu.matmul %82, %81, %cst_57 {dimension_numbers = #tpu.dot_dimension_numbers<[1], [1], [0], [0], [0, 0, 1, 0], [], []>} : vector<1x32xf32>, vector<2x32xf32>, vector<1x2xf32> -> vector<1x2xf32>
    %c0_58 = arith.constant 0 : index
    %c0_59 = arith.constant 0 : index
    %84 = vector.load %arg10[%c0_58, %c0_59] : memref<1x1xf32, #tpu.memory_space<vmem>>, vector<1x1xf32>
    %85 = vector.broadcast %84 : vector<1x1xf32> to vector<1x2xf32>
    %86 = arith.addf %83, %85 : vector<1x2xf32>
    %c0_60 = arith.constant 0 : index
    %c0_61 = arith.constant 0 : index
    %87 = vector.load %arg11[%c0_60, %c0_61] : memref<1x2xf32, #tpu.memory_space<vmem>>, vector<1x2xf32>
    tpu.vector_store %arg11[%c0_60, %c0_61], %86 {strides = array<i32>} : memref<1x2xf32, #tpu.memory_space<vmem>>, vector<1x2xf32>,
    %88 = arith.negf %86 : vector<1x2xf32>
    %89 = math.exp %88 : vector<1x2xf32>
    %cst_62 = arith.constant 1.000000e+00 : f32
    %90 = vector.broadcast %cst_62 : f32 to vector<1x2xf32>
    %91 = arith.addf %90, %89 : vector<1x2xf32>
    %92 = arith.divf %90, %91 : vector<1x2xf32>
    %c0_63 = arith.constant 0 : index
    %c0_64 = arith.constant 0 : index
    %93 = vector.load %arg12[%c0_63, %c0_64] : memref<1x2xf32, #tpu.memory_space<vmem>>, vector<1x2xf32>
    tpu.vector_store %arg12[%c0_63, %c0_64], %92 {strides = array<i32>} : memref<1x2xf32, #tpu.memory_space<vmem>>, vector<1x2xf32>,
    return
  }
  func.func @transform_0(%arg0: i32) -> (i32, i32) {
    %c0_i32 = arith.constant 0 : i32
    %c0_i32_0 = arith.constant 0 : i32
    return %arg0, %c0_i32 : i32, i32
  }
  func.func @transform_1(%arg0: i32) -> (i32, i32) {
    %c0_i32 = arith.constant 0 : i32
    %c0_i32_0 = arith.constant 0 : i32
    %c0_i32_1 = arith.constant 0 : i32
    return %c0_i32, %c0_i32_0 : i32, i32
  }
  func.func @transform_2(%arg0: i32) -> (i32, i32) {
    %c0_i32 = arith.constant 0 : i32
    %c0_i32_0 = arith.constant 0 : i32
    %c0_i32_1 = arith.constant 0 : i32
    return %c0_i32, %c0_i32_0 : i32, i32
  }
  func.func @transform_3(%arg0: i32) -> (i32, i32) {
    %c0_i32 = arith.constant 0 : i32
    %c0_i32_0 = arith.constant 0 : i32
    %c0_i32_1 = arith.constant 0 : i32
    return %c0_i32, %c0_i32_0 : i32, i32
  }
  func.func @transform_4(%arg0: i32) -> (i32, i32) {
    %c0_i32 = arith.constant 0 : i32
    %c0_i32_0 = arith.constant 0 : i32
    %c0_i32_1 = arith.constant 0 : i32
    return %c0_i32, %c0_i32_0 : i32, i32
  }
  func.func @transform_5(%arg0: i32) -> (i32, i32) {
    %c0_i32 = arith.constant 0 : i32
    %c0_i32_0 = arith.constant 0 : i32
    %c0_i32_1 = arith.constant 0 : i32
    return %c0_i32, %c0_i32_0 : i32, i32
  }
  func.func @transform_6(%arg0: i32) -> (i32, i32, i32) {
    %c0_i32 = arith.constant 0 : i32
    %c0_i32_0 = arith.constant 0 : i32
    %c0_i32_1 = arith.constant 0 : i32
    %c0_i32_2 = arith.constant 0 : i32
    return %c0_i32, %c0_i32_0, %c0_i32_1 : i32, i32, i32
  }
  func.func @transform_7(%arg0: i32) -> (i32, i32, i32) {
    %c0_i32 = arith.constant 0 : i32
    %c0_i32_0 = arith.constant 0 : i32
    %c0_i32_1 = arith.constant 0 : i32
    %c0_i32_2 = arith.constant 0 : i32
    return %c0_i32, %c0_i32_0, %c0_i32_1 : i32, i32, i32
  }
  func.func @transform_8(%arg0: i32) -> (i32, i32) {
    %c0_i32 = arith.constant 0 : i32
    %c0_i32_0 = arith.constant 0 : i32
    %c0_i32_1 = arith.constant 0 : i32
    return %c0_i32, %c0_i32_0 : i32, i32
  }
  func.func @transform_9(%arg0: i32) -> (i32, i32) {
    %c0_i32 = arith.constant 0 : i32
    %c0_i32_0 = arith.constant 0 : i32
    %c0_i32_1 = arith.constant 0 : i32
    return %c0_i32, %c0_i32_0 : i32, i32
  }
  func.func @transform_10(%arg0: i32) -> (i32, i32) {
    %c0_i32 = arith.constant 0 : i32
    %c0_i32_0 = arith.constant 0 : i32
    return %c0_i32, %arg0 : i32, i32
  }
  func.func @transform_11(%arg0: i32) -> (i32, i32) {
    %c0_i32 = arith.constant 0 : i32
    %c0_i32_0 = arith.constant 0 : i32
    return %c0_i32, %arg0 : i32, i32
  }
}

</mosaic_0001>

<bundles_post_ra>
// kernel: tpu_custom_call.1
= control target key start
LH: loop header
LB: loop body
LE: loop exit
PB: predicated region body
PF: predicated region fallthrough
CT: control target
= control target key end

     0   :  { %s1518_s0 = inlined_call_operand.vmem [shape: f32[2,16], index: 0, kind: input, shape index: {}]   ;;  %s1519_s1 = inlined_call_operand.vmem [shape: f32[16,256], index: 1, kind: input, shape index: {}]   ;;  %s1520_s2 = inlined_call_operand.vmem [shape: f32[1,256], index: 2, kind: input, shape index: {}]   ;;  %s1521_s3 = inlined_call_operand.hbm [shape: f32[256,256], index: 3, kind: input, shape index: {}]   ;;  %s1522_s4 = inlined_call_operand.vmem [shape: f32[1,256], index: 4, kind: input, shape index: {}]   ;;  %s1523_s5 = inlined_call_operand.vmem [shape: f32[256,32], index: 5, kind: input, shape index: {}]   ;;  %s1524_s6 = inlined_call_operand.vmem [shape: f32[4,32,32], index: 6, kind: input, shape index: {}]   ;;  %s1525_s7 = inlined_call_operand.vmem [shape: f32[4,1,32], index: 7, kind: input, shape index: {}]   ;;  %s1526_s8 = inlined_call_operand.vmem [shape: f32[1,32], index: 8, kind: input, shape index: {}]   ;;  %s1527_s9 = inlined_call_operand.<no memory space> [shape: f32[1,1], index: 9, kind: input, shape index: {}]   ;;  %s1528_s10 = inlined_call_operand.hbm [shape: f32[1,2], index: 10, kind: output, shape index: {0}]   ;;  %s1529_s11 = inlined_call_operand.hbm [shape: f32[1,2], index: 11, kind: output, shape index: {1}]  }
   0x1   :  { %v17_v0 = vstv %s1527_s9 }
   0x2   :  { %18 = vst [vmem:[#allocation2] sm:$0x1] %v17_v0 }
   0x3   :  { %19 = vsyncpa [#allocation4], 0 }
   0x4   :  { %20 = vsyncpa [#allocation5], 0 }
   0x5   :  { %21 = vsyncpa [#allocation8], 0  ;;  %s32_s21 = sshll.u32 %s1521_s3, 4  ;;  %s919_s22 = smov [#allocation3]   ;;  %s33_s21 = int_to_ptr.hbm [resolvable:$true] %s32_s21 }
   0x6   :  { %s34_s23 = sshll.u32 %s919_s22, 4  ;;  %s920_s24 = smov 256   ;;  %s35_s23 = int_to_ptr.vmem [resolvable:$true] %s34_s23 }
   0x7   :  { %s921_s25 = smov 16  }
   0x8   :  { %40 = dma.hbm_to_vmem [thread:$0]  %s33_s21, 8192, %s35_s23, [#allocation4], %s920_s24, %s920_s24, %s921_s25  }
   0x9   :  { %913 = dma.done.wait [#allocation4], 8192  }
   0xa   :  { %914 = vsyncadd [#allocation4], 4294959104  ;;  %v60_v1 = vld [vmem:[%s1519_s1 + $0x10] sm:$0xff]  ;;  %v58_v2 = vld [vmem:[%s1519_s1] sm:$0xff]  ;;  %vm68_vm0 = vcmask 130048   ;;  %vm535_vm1 = vcmask 261120  }
   0xb   :  { %v61_v3 = vld [vmem:[%s1519_s1 + $0x18] sm:$0xff]  ;;  %86 = vmatpush.msra.mxu0 %v60_v1  ;;  %v57_v4 = vld [vmem:[%s1518_s0] sm:$0x3]  ;;  %v59_v5 = vld [vmem:[%s1519_s1 + $0x8] sm:$0xff]  ;;  %s923_s17 = smov [#allocation6]   ;;  %s773_s21 = sshll.u32 %s1528_s10, 4  ;;  %s774_s21 = int_to_ptr.hbm [resolvable:$true] %s773_s21 }
   0xc   :  { %106 = vmatpush.msra.mxu1 %v61_v3  ;;  %v1006_v6 = vld [vmem:[#allocation3 + $0xf0] sm:$0xff]  ;;  %v1009_v7 = vld [vmem:[#allocation3 + $0xf8] sm:$0xff]  ;;  %v1011_v8 = vld [vmem:[#allocation3 + $0xe0] sm:$0xff]  ;;  %s771_s18 = sshll.u32 %s923_s17, 4  ;;  %vm744_vm2 = vcmask 8192   ;;  %s784_s24 = sshll.u32 %s1529_s11, 4  ;;  %s772_s18 = int_to_ptr.vmem [resolvable:$true] %s771_s18  ;;  %s785_s24 = int_to_ptr.hbm [resolvable:$true] %s784_s24 }
   0xd   :  { %184 = vmatpush.msra.mxu2 %v1006_v6  ;;  %87 = vmatpush.msra.mxu0 %v58_v2  ;;  %v1013_v9 = vld [vmem:[#allocation3 + $0x1f0] sm:$0xff]  ;;  %v1015_v10 = vld [vmem:[#allocation3 + $0x1f8] sm:$0xff]  ;;  %v1017_v11 = vld [vmem:[#allocation3 + $0xe8] sm:$0xff] }
   0xe   :  { %107 = vmatpush.msra.mxu1 %v59_v5  ;;  %799 = vmatmul.msk.f32.vlgmr.msra.gmra.mxu0 %vm68_vm0, %v57_v4  ;;  %v1019_v12 = vld [vmem:[#allocation3 + $0xd0] sm:$0xff]  ;;  %v1023_v13 = vld [vmem:[#allocation3 + $0x1e0] sm:$0xff]  ;;  %v1025_v14 = vld [vmem:[#allocation3 + $0x1e8] sm:$0xff] }
   0xf   :  { %800 = vmatmul.msk.f32.vlgmr.msra.gmra.mxu1 %vm68_vm0, %v57_v4  ;;  %224 = vmatpush.msrb.mxu0 %v1009_v7  ;;  %v1029_v15 = vld [vmem:[#allocation3 + $0xd8] sm:$0xff]  ;;  %v1031_v16 = vld [vmem:[#allocation3 + $0xc0] sm:$0xff]  ;;  %v1035_v17 = vld [vmem:[#allocation3 + $0x1d0] sm:$0xff] }
  0x10   :  { %185 = vmatpush.msra.mxu2 %v1011_v8  ;;  %204 = vmatpush.msra.mxu3 %v1013_v9  ;;  %v1037_v18 = vld [vmem:[#allocation3 + $0x1d8] sm:$0xff]  ;;  %v1041_v19 = vld [vmem:[#allocation3 + $0xc8] sm:$0xff]  ;;  %v1043_v20 = vld [vmem:[#allocation3 + $0xb0] sm:$0xff] }
  0x11   :  { %244 = vmatpush.msrb.mxu1 %v1015_v10  ;;  %225 = vmatpush.msrb.mxu0 %v1017_v11  ;;  %v1047_v21 = vld [vmem:[#allocation3 + $0x1c0] sm:$0xff]  ;;  %v1049_v22 = vld [vmem:[#allocation3 + $0x1c8] sm:$0xff]  ;;  %v1053_v23 = vld [vmem:[#allocation3 + $0xb8] sm:$0xff] }
  0x12   :  { %186 = vmatpush.msra.mxu2 %v1019_v12  ;;  %205 = vmatpush.msra.mxu3 %v1023_v13  ;;  %v1055_v24 = vld [vmem:[#allocation3 + $0xa0] sm:$0xff]  ;;  %v1059_v25 = vld [vmem:[#allocation3 + $0x1b0] sm:$0xff]  ;;  %v1061_v26 = vld [vmem:[#allocation3 + $0x1b8] sm:$0xff] }
  0x13   :  { %245 = vmatpush.msrb.mxu1 %v1025_v14  ;;  %226 = vmatpush.msrb.mxu0 %v1029_v15  ;;  %v1065_v27 = vld [vmem:[#allocation3 + $0xa8] sm:$0xff]  ;;  %v1067_v28 = vld [vmem:[#allocation3 + $0x90] sm:$0xff]  ;;  %v1071_v29 = vld [vmem:[#allocation3 + $0x1a0] sm:$0xff] }
  0x14   :  { %187 = vmatpush.msra.mxu2 %v1031_v16  ;;  %206 = vmatpush.msra.mxu3 %v1035_v17  ;;  %v1073_v30 = vld [vmem:[#allocation3 + $0x1a8] sm:$0xff]  ;;  %v1077_v31 = vld [vmem:[#allocation3 + $0x98] sm:$0xff]  ;;  %v1079_v32 = vld [vmem:[#allocation3 + $0x80] sm:$0xff] }
  0x15   :  { %246 = vmatpush.msrb.mxu1 %v1037_v18  ;;  %227 = vmatpush.msrb.mxu0 %v1041_v19  ;;  %1538 = vst [vmem:[#allocation12_spill] sm:$0xff] %v1079_v32  ;;  %v1083_v33 = vld [vmem:[#allocation3 + $0x190] sm:$0xff]  ;;  %v1085_v34 = vld [vmem:[#allocation3 + $0x198] sm:$0xff]  ;;  %v1089_v35 = vld [vmem:[#allocation3 + $0x88] sm:$0xff] }
  0x16   :  { %188 = vmatpush.msra.mxu2 %v1043_v20  ;;  %207 = vmatpush.msra.mxu3 %v1047_v21  ;;  %v1091_v36 = vld [vmem:[#allocation3 + $0x70] sm:$0xff]  ;;  %v1095_v37 = vld [vmem:[#allocation3 + $0x180] sm:$0xff]  ;;  %v1097_v38 = vld [vmem:[#allocation3 + $0x78] sm:$0xff] }
  0x17   :  { %247 = vmatpush.msrb.mxu1 %v1049_v22  ;;  %228 = vmatpush.msrb.mxu0 %v1053_v23  ;;  %1539 = vst [vmem:[#allocation13_spill] sm:$0xff] %v1097_v38  ;;  %v1099_v39 = vld [vmem:[#allocation3 + $0x188] sm:$0xff]  ;;  %v1103_v40 = vld [vmem:[#allocation3 + $0x60] sm:$0xff]  ;;  %v1105_v41 = vld [vmem:[#allocation3 + $0x170] sm:$0xff] }
  0x18   :  { %189 = vmatpush.msra.mxu2 %v1055_v24  ;;  %208 = vmatpush.msra.mxu3 %v1059_v25  ;;  %v1109_v42 = vld [vmem:[#allocation3 + $0x178] sm:$0xff]  ;;  %v1113_v43 = vld [vmem:[#allocation3 + $0x68] sm:$0xff]  ;;  %v1115_v44 = vld [vmem:[#allocation3 + $0x50] sm:$0xff] }
  0x19   :  { %248 = vmatpush.msrb.mxu1 %v1061_v26  ;;  %229 = vmatpush.msrb.mxu0 %v1065_v27  ;;  %1540 = vst [vmem:[#allocation14_spill] sm:$0xff] %v1115_v44  ;;  %v1119_v45 = vld [vmem:[#allocation3 + $0x160] sm:$0xff]  ;;  %v1121_v46 = vld [vmem:[#allocation3 + $0x168] sm:$0xff]  ;;  %v1125_v47 = vld [vmem:[#allocation3 + $0x58] sm:$0xff] }
  0x1a   :  { %190 = vmatpush.msra.mxu2 %v1067_v28  ;;  %209 = vmatpush.msra.mxu3 %v1071_v29  ;;  %1541 = vst [vmem:[#allocation15_spill] sm:$0xff] %v1119_v45  ;;  %v1127_v48 = vld [vmem:[#allocation3 + $0x40] sm:$0xff]  ;;  %v1131_v49 = vld [vmem:[#allocation3 + $0x150] sm:$0xff]  ;;  %v1133_v50 = vld [vmem:[#allocation3 + $0x158] sm:$0xff] }
  0x1b   :  { %249 = vmatpush.msrb.mxu1 %v1073_v30  ;;  %230 = vmatpush.msrb.mxu0 %v1077_v31  ;;  %1542 = vst [vmem:[#allocation16_spill] sm:$0xff] %v1125_v47  ;;  %v1137_v51 = vld [vmem:[#allocation3 + $0x48] sm:$0xff]  ;;  %v1139_v52 = vld [vmem:[#allocation3 + $0x30] sm:$0xff]  ;;  %v1143_v53 = vld [vmem:[#allocation3 + $0x140] sm:$0xff] }
  0x1c   :  { %191 = vmatpush.msra.mxu2 %v1079_v32  ;;  %210 = vmatpush.msra.mxu3 %v1083_v33  ;;  %1543 = vst [vmem:[#allocation17_spill] sm:$0xff] %v1131_v49  ;;  %v1145_v54 = vld [vmem:[#allocation3 + $0x148] sm:$0xff]  ;;  %v1149_v55 = vld [vmem:[#allocation3 + $0x38] sm:$0xff]  ;;  %v1156_v56 = vld [vmem:[#allocation3 + $0x20] sm:$0xff] }
  0x1d   :  { %250 = vmatpush.msrb.mxu1 %v1085_v34  ;;  %231 = vmatpush.msrb.mxu0 %v1089_v35  ;;  %1544 = vst [vmem:[#allocation18_spill] sm:$0xff] %v1137_v51  ;;  %v1158_v57 = vld [vmem:[#allocation3 + $0x130] sm:$0xff]  ;;  %v1160_v58 = vld [vmem:[#allocation3 + $0x28] sm:$0xff]  ;;  %v1164_v59 = vld [vmem:[#allocation3 + $0x138] sm:$0xff] }
  0x1e   :  { %192 = vmatpush.msra.mxu2 %v1091_v36  ;;  %211 = vmatpush.msra.mxu3 %v1095_v37  ;;  %1545 = vst [vmem:[#allocation19_spill] sm:$0xff] %v1158_v57  ;;  %v1168_v60 = vld [vmem:[#allocation3 + $0x10] sm:$0xff]  ;;  %v1170_v61 = vld [vmem:[#allocation3 + $0x120] sm:$0xff]  ;;  %v1172_v62 = vld [vmem:[#allocation3 + $0x18] sm:$0xff] }
  0x1f   :  { %251 = vmatpush.msrb.mxu1 %v1099_v39  ;;  %232 = vmatpush.msrb.mxu0 %v1097_v38  ;;  %v1176_v63 = vld [vmem:[#allocation3 + $0x128] sm:$0xff]  ;;  %v1180_v0 = vld [vmem:[#allocation3] sm:$0xff]  ;;  %v1182_v1 = vld [vmem:[#allocation3 + $0x110] sm:$0xff] }
  0x20   :  { %193 = vmatpush.msra.mxu2 %v1103_v40  ;;  %212 = vmatpush.msra.mxu3 %v1105_v41  ;;  %v1184_v2 = vld [vmem:[#allocation3 + $0x8] sm:$0xff]  ;;  %v1188_v3 = vld [vmem:[#allocation3 + $0x118] sm:$0xff]  ;;  %v1192_v4 = vld [vmem:[#allocation3 + $0x100] sm:$0xff] }
  0x21   :  { %252 = vmatpush.msrb.mxu1 %v1109_v42  ;;  %233 = vmatpush.msrb.mxu0 %v1113_v43  ;;  %v1194_v5 = vld [vmem:[#allocation3 + $0x108] sm:$0xff] }
  0x22   :  { %194 = vmatpush.msra.mxu2 %v1115_v44  ;;  %213 = vmatpush.msra.mxu3 %v1119_v45 }
  0x23   :  { %253 = vmatpush.msrb.mxu1 %v1121_v46  ;;  %234 = vmatpush.msrb.mxu0 %v1125_v47 }
  0x24   :  { %195 = vmatpush.msra.mxu2 %v1127_v48  ;;  %214 = vmatpush.msra.mxu3 %v1131_v49 }
  0x25   :  { %254 = vmatpush.msrb.mxu1 %v1133_v50  ;;  %235 = vmatpush.msrb.mxu0 %v1137_v51 }
  0x26   :  { %196 = vmatpush.msra.mxu2 %v1139_v52  ;;  %215 = vmatpush.msra.mxu3 %v1143_v53 }
  0x27   :  { %255 = vmatpush.msrb.mxu1 %v1145_v54  ;;  %236 = vmatpush.msrb.mxu0 %v1149_v55 }
  0x28   :  { %197 = vmatpush.msra.mxu2 %v1156_v56  ;;  %216 = vmatpush.msra.mxu3 %v1158_v57 }
  0x29   :  { %237 = vmatpush.msrb.mxu0 %v1160_v58  ;;  %256 = vmatpush.msrb.mxu1 %v1164_v59 }
  0x2a   :  { %198 = vmatpush.msra.mxu2 %v1168_v60  ;;  %217 = vmatpush.msra.mxu3 %v1170_v61 }
  0x2b   :  { %238 = vmatpush.msrb.mxu0 %v1172_v62  ;;  %257 = vmatpush.msrb.mxu1 %v1176_v63 }
  0x2c   :  { %199 = vmatpush.msra.mxu2 %v1180_v0  ;;  %218 = vmatpush.msra.mxu3 %v1182_v1 }
  0x2d   :  { %239 = vmatpush.msrb.mxu0 %v1184_v2  ;;  %258 = vmatpush.msrb.mxu1 %v1188_v3 }
  0x2e   :  { %219 = vmatpush.msra.mxu3 %v1192_v4  ;;  %266 = vmatpush.msrb.mxu2 %v1006_v6 }
  0x2f   :  { %259 = vmatpush.msrb.mxu1 %v1194_v5  ;;  %306 = vmatpush.msra.mxu0 %v1009_v7 }
  0x30   :  { %286 = vmatpush.msrb.mxu3 %v1013_v9  ;;  %267 = vmatpush.msrb.mxu2 %v1011_v8 }
  0x31   :  { %326 = vmatpush.msra.mxu1 %v1015_v10  ;;  %307 = vmatpush.msra.mxu0 %v1017_v11 }
  0x32   :  { %287 = vmatpush.msrb.mxu3 %v1023_v13  ;;  %268 = vmatpush.msrb.mxu2 %v1019_v12 }
  0x33   :  { %327 = vmatpush.msra.mxu1 %v1025_v14  ;;  %308 = vmatpush.msra.mxu0 %v1029_v15 }
  0x34   :  { %288 = vmatpush.msrb.mxu3 %v1035_v17  ;;  %269 = vmatpush.msrb.mxu2 %v1031_v16 }
  0x35   :  { %328 = vmatpush.msra.mxu1 %v1037_v18  ;;  %309 = vmatpush.msra.mxu0 %v1041_v19 }
  0x36   :  { %289 = vmatpush.msrb.mxu3 %v1047_v21  ;;  %270 = vmatpush.msrb.mxu2 %v1043_v20 }
  0x37   :  { %329 = vmatpush.msra.mxu1 %v1049_v22  ;;  %310 = vmatpush.msra.mxu0 %v1053_v23 }
  0x38   :  { %290 = vmatpush.msrb.mxu3 %v1059_v25  ;;  %271 = vmatpush.msrb.mxu2 %v1055_v24 }
  0x39   :  { %330 = vmatpush.msra.mxu1 %v1061_v26  ;;  %311 = vmatpush.msra.mxu0 %v1065_v27 }
  0x3a   :  { %291 = vmatpush.msrb.mxu3 %v1071_v29  ;;  %272 = vmatpush.msrb.mxu2 %v1067_v28 }
  0x3b   :  { %331 = vmatpush.msra.mxu1 %v1073_v30  ;;  %312 = vmatpush.msra.mxu0 %v1077_v31 }
  0x3c   :  { %292 = vmatpush.msrb.mxu3 %v1083_v33  ;;  %273 = vmatpush.msrb.mxu2 %v1079_v32  ;;  %v62_v32 = vld [vmem:[%s1520_s2] sm:$0x3] }
  0x3d   :  { %332 = vmatpush.msra.mxu1 %v1085_v34  ;;  %313 = vmatpush.msra.mxu0 %v1089_v35 }
  0x3e   :  { %293 = vmatpush.msrb.mxu3 %v1095_v37  ;;  %274 = vmatpush.msrb.mxu2 %v1091_v36 }
  0x3f   :  { %333 = vmatpush.msra.mxu1 %v1099_v39  ;;  %314 = vmatpush.msra.mxu0 %v1097_v38  ;;  %v64_v38 = vperm.slane %v62_v32, 0 }
  0x40   :  { %294 = vmatpush.msrb.mxu3 %v1105_v41  ;;  %275 = vmatpush.msrb.mxu2 %v1103_v40 }
  0x41   :  { %334 = vmatpush.msra.mxu1 %v1109_v42  ;;  %315 = vmatpush.msra.mxu0 %v1113_v43 }
  0x42   :  { %295 = vmatpush.msrb.mxu3 %v1119_v45  ;;  %276 = vmatpush.msrb.mxu2 %v1115_v44  ;;  %v65_v45 = vperm.slane %v62_v32, 1 }
  0x43   :  { %335 = vmatpush.msra.mxu1 %v1121_v46  ;;  %316 = vmatpush.msra.mxu0 %v1125_v47 }
  0x44   :  { %296 = vmatpush.msrb.mxu3 %v1131_v49  ;;  %277 = vmatpush.msrb.mxu2 %v1127_v48 }
  0x45   :  { %336 = vmatpush.msra.mxu1 %v1133_v50  ;;  %317 = vmatpush.msra.mxu0 %v1137_v51 }
  0x46   :  { %297 = vmatpush.msrb.mxu3 %v1143_v53  ;;  %278 = vmatpush.msrb.mxu2 %v1139_v52 }
  0x47   :  { %337 = vmatpush.msra.mxu1 %v1145_v54  ;;  %318 = vmatpush.msra.mxu0 %v1149_v55 }
  0x48   :  { %298 = vmatpush.msrb.mxu3 %v1158_v57  ;;  %279 = vmatpush.msrb.mxu2 %v1156_v56 }
  0x49   :  { %338 = vmatpush.msra.mxu1 %v1164_v59  ;;  %319 = vmatpush.msra.mxu0 %v1160_v58 }
  0x4a   :  { %299 = vmatpush.msrb.mxu3 %v1170_v61  ;;  %280 = vmatpush.msrb.mxu2 %v1168_v60 }
  0x4b   :  { %339 = vmatpush.msra.mxu1 %v1176_v63  ;;  %320 = vmatpush.msra.mxu0 %v1172_v62 }
  0x4c   :  { %300 = vmatpush.msrb.mxu3 %v1182_v1  ;;  %281 = vmatpush.msrb.mxu2 %v1180_v0 }
  0x4d   :  { %340 = vmatpush.msra.mxu1 %v1188_v3  ;;  %321 = vmatpush.msra.mxu0 %v1184_v2 }
  0x4e   :  { %301 = vmatpush.msrb.mxu3 %v1192_v4 }
  0x4f   :  { %341 = vmatpush.msra.mxu1 %v1194_v5 }
  0x8b   :  { %v89_v49 = vpop.f32.mrf.mxu0 }
  0x8c   :  { %v109_v44 = vpop.f32.mrf.mxu1  ;;  %v90_v47 = vadd.f32 %v89_v49, %v64_v38  ;;  %v482_v38 = vld [vmem:[%s1523_s5 + $0xd0] sm:$0xff] }
  0x8d   :  { %v110_v32 = vadd.f32 %v109_v44, %v65_v45 }
  0x8e   :  { %v112_v51 = vmax.f32 %v90_v47, 0.0 }
  0x8f   :  { %v113_v57 = vmax.f32 %v110_v32, 0.0 }
  0x90   :  { %200 = vmatmul.f32.vlgmr.msra.gmra.mxu2 %v112_v51  ;;  %240 = vmatmul.f32.vlgmr.msrb.gmra.mxu0 %v112_v51 }
  0x91   :  { %220 = vmatmul.f32.vlgmr.msra.gmra.mxu3 %v113_v57  ;;  %260 = vmatmul.f32.vlgmr.msrb.gmra.mxu1 %v113_v57  ;;  %v463_v57 = vld [vmem:[%s1523_s5 + $0x38] sm:$0xff] }
  0x92   :  { %368 = vmatpush.msra.mxu3 %v1013_v9  ;;  %408 = vmatpush.msrb.mxu1 %v1015_v10  ;;  %v1549_v9 = vld [vmem:[#allocation17_spill] sm:$0xff]  ;;  %v1550_v10 = vld [vmem:[#allocation14_spill] sm:$0xff] }
  0x93   :  { %348 = vmatpush.msra.mxu2 %v1006_v6  ;;  %388 = vmatpush.msrb.mxu0 %v1009_v7  ;;  %v1546_v6 = vld [vmem:[#allocation12_spill] sm:$0xff]  ;;  %v1547_v7 = vld [vmem:[#allocation13_spill] sm:$0xff] }
  0x94   :  { %369 = vmatpush.msra.mxu3 %v1023_v13  ;;  %409 = vmatpush.msrb.mxu1 %v1025_v14  ;;  %v1553_v13 = vld [vmem:[#allocation19_spill] sm:$0xff] }
  0x95   :  { %349 = vmatpush.msra.mxu2 %v1011_v8  ;;  %389 = vmatpush.msrb.mxu0 %v1017_v11  ;;  %v1548_v8 = vld [vmem:[#allocation15_spill] sm:$0xff]  ;;  %v1551_v11 = vld [vmem:[#allocation16_spill] sm:$0xff] }
  0x96   :  { %370 = vmatpush.msra.mxu3 %v1035_v17  ;;  %410 = vmatpush.msrb.mxu1 %v1037_v18  ;;  %v178_v14 = vld [vmem:[%s1522_s4] sm:$0x3] }
  0x97   :  { %350 = vmatpush.msra.mxu2 %v1019_v12  ;;  %390 = vmatpush.msrb.mxu0 %v1029_v15  ;;  %v1552_v12 = vld [vmem:[#allocation18_spill] sm:$0xff]  ;;  %v1332_v15 = vperm.slane %v178_v14, 1 }
  0x98   :  { %371 = vmatpush.msra.mxu3 %v1047_v21  ;;  %411 = vmatpush.msrb.mxu1 %v1049_v22 }
  0x99   :  { %351 = vmatpush.msra.mxu2 %v1031_v16  ;;  %391 = vmatpush.msrb.mxu0 %v1041_v19 }
  0x9a   :  { %372 = vmatpush.msra.mxu3 %v1059_v25  ;;  %412 = vmatpush.msrb.mxu1 %v1061_v26 }
  0x9b   :  { %352 = vmatpush.msra.mxu2 %v1043_v20  ;;  %392 = vmatpush.msrb.mxu0 %v1053_v23  ;;  %v1335_v20 = vperm.slane %v178_v14, 0 }
  0x9c   :  { %373 = vmatpush.msra.mxu3 %v1071_v29  ;;  %413 = vmatpush.msrb.mxu1 %v1073_v30  ;;  %v471_v29 = vld [vmem:[%s1523_s5 + $0x78] sm:$0xff]  ;;  %v470_v30 = vld [vmem:[%s1523_s5 + $0x70] sm:$0xff] }
  0x9d   :  { %353 = vmatpush.msra.mxu2 %v1055_v24  ;;  %393 = vmatpush.msrb.mxu0 %v1065_v27  ;;  %v487_v27 = vld [vmem:[%s1523_s5 + $0xf8] sm:$0xff] }
  0x9e   :  { %374 = vmatpush.msra.mxu3 %v1083_v33  ;;  %414 = vmatpush.msrb.mxu1 %v1085_v34  ;;  %v469_v33 = vld [vmem:[%s1523_s5 + $0x68] sm:$0xff]  ;;  %v484_v34 = vld [vmem:[%s1523_s5 + $0xe0] sm:$0xff] }
  0x9f   :  { %354 = vmatpush.msra.mxu2 %v1067_v28  ;;  %394 = vmatpush.msrb.mxu0 %v1077_v31  ;;  %v486_v28 = vld [vmem:[%s1523_s5 + $0xf0] sm:$0xff]  ;;  %v485_v31 = vld [vmem:[%s1523_s5 + $0xe8] sm:$0xff] }
  0xa0   :  { %375 = vmatpush.msra.mxu3 %v1095_v37  ;;  %415 = vmatpush.msrb.mxu1 %v1099_v39  ;;  %v467_v37 = vld [vmem:[%s1523_s5 + $0x58] sm:$0xff]  ;;  %v466_v39 = vld [vmem:[%s1523_s5 + $0x50] sm:$0xff] }
  0xa1   :  { %355 = vmatpush.msra.mxu2 %v1546_v6  ;;  %395 = vmatpush.msrb.mxu0 %v1089_v35  ;;  %v468_v35 = vld [vmem:[%s1523_s5 + $0x60] sm:$0xff] }
  0xa2   :  { %376 = vmatpush.msra.mxu3 %v1105_v41  ;;  %416 = vmatpush.msrb.mxu1 %v1109_v42  ;;  %v480_v41 = vld [vmem:[%s1523_s5 + $0xc0] sm:$0xff]  ;;  %v479_v42 = vld [vmem:[%s1523_s5 + $0xb8] sm:$0xff] }
  0xa3   :  { %356 = vmatpush.msra.mxu2 %v1091_v36  ;;  %396 = vmatpush.msrb.mxu0 %v1547_v7  ;;  %v483_v36 = vld [vmem:[%s1523_s5 + $0xd8] sm:$0xff] }
  0xa4   :  { %377 = vmatpush.msra.mxu3 %v1548_v8  ;;  %417 = vmatpush.msrb.mxu1 %v1121_v46 }
  0xa5   :  { %357 = vmatpush.msra.mxu2 %v1103_v40  ;;  %397 = vmatpush.msrb.mxu0 %v1113_v43  ;;  %v481_v40 = vld [vmem:[%s1523_s5 + $0xc8] sm:$0xff] }
  0xa6   :  { %378 = vmatpush.msra.mxu3 %v1549_v9  ;;  %418 = vmatpush.msrb.mxu1 %v1133_v50 }
  0xa7   :  { %358 = vmatpush.msra.mxu2 %v1550_v10  ;;  %398 = vmatpush.msrb.mxu0 %v1551_v11 }
  0xa8   :  { %379 = vmatpush.msra.mxu3 %v1143_v53  ;;  %419 = vmatpush.msrb.mxu1 %v1145_v54  ;;  %v465_v53 = vld [vmem:[%s1523_s5 + $0x48] sm:$0xff]  ;;  %v478_v54 = vld [vmem:[%s1523_s5 + $0xb0] sm:$0xff] }
  0xa9   :  { %359 = vmatpush.msra.mxu2 %v1127_v48  ;;  %399 = vmatpush.msrb.mxu0 %v1552_v12 }
  0xaa   :  { %380 = vmatpush.msra.mxu3 %v1553_v13  ;;  %420 = vmatpush.msrb.mxu1 %v1164_v59  ;;  %v462_v59 = vld [vmem:[%s1523_s5 + $0x30] sm:$0xff] }
  0xab   :  { %360 = vmatpush.msra.mxu2 %v1139_v52  ;;  %400 = vmatpush.msrb.mxu0 %v1149_v55  ;;  %v464_v55 = vld [vmem:[%s1523_s5 + $0x40] sm:$0xff] }
  0xac   :  { %381 = vmatpush.msra.mxu3 %v1170_v61  ;;  %421 = vmatpush.msrb.mxu1 %v1176_v63  ;;  %v461_v61 = vld [vmem:[%s1523_s5 + $0x28] sm:$0xff]  ;;  %v460_v63 = vld [vmem:[%s1523_s5 + $0x20] sm:$0xff] }
  0xad   :  { %361 = vmatpush.msra.mxu2 %v1156_v56  ;;  %401 = vmatpush.msrb.mxu0 %v1160_v58  ;;  %v477_v56 = vld [vmem:[%s1523_s5 + $0xa8] sm:$0xff]  ;;  %v476_v58 = vld [vmem:[%s1523_s5 + $0xa0] sm:$0xff] }
  0xae   :  { %382 = vmatpush.msra.mxu3 %v1182_v1  ;;  %422 = vmatpush.msrb.mxu1 %v1188_v3  ;;  %v459_v1 = vld [vmem:[%s1523_s5 + $0x18] sm:$0xff]  ;;  %v458_v3 = vld [vmem:[%s1523_s5 + $0x10] sm:$0xff] }
  0xaf   :  { %362 = vmatpush.msra.mxu2 %v1168_v60  ;;  %402 = vmatpush.msrb.mxu0 %v1172_v62  ;;  %v475_v60 = vld [vmem:[%s1523_s5 + $0x98] sm:$0xff]  ;;  %v474_v62 = vld [vmem:[%s1523_s5 + $0x90] sm:$0xff] }
  0xb0   :  { %383 = vmatpush.msra.mxu3 %v1192_v4  ;;  %423 = vmatpush.msrb.mxu1 %v1194_v5  ;;  %v457_v4 = vld [vmem:[%s1523_s5 + $0x8] sm:$0xff]  ;;  %v456_v5 = vld [vmem:[%s1523_s5] sm:$0xff] }
  0xb1   :  { %363 = vmatpush.msra.mxu2 %v1180_v0  ;;  %403 = vmatpush.msrb.mxu0 %v1184_v2  ;;  %v473_v0 = vld [vmem:[%s1523_s5 + $0x88] sm:$0xff]  ;;  %v472_v2 = vld [vmem:[%s1523_s5 + $0x80] sm:$0xff] }
 0x10d   :  { %v241_v16 = vpop.f32.mrf.mxu0 }
 0x10e   :  { %v242_v17 = vadd.f32 %v241_v16, %v1332_v15  ;;  %v261_v18 = vpop.f32.mrf.mxu1  ;;  %v804_v16 = vld [vmem:[%s1524_s6 + $0x38] sm:$0xff] }
 0x110   :  { %v262_v19 = vadd.f32 %v261_v18, %v242_v17  ;;  %v802_v17 = vld [vmem:[%s1524_s6 + $0x28] sm:$0xff]  ;;  %v801_v18 = vld [vmem:[%s1524_s6 + $0x20] sm:$0xff] }
 0x112   :  { %v265_v21 = vmax.f32 %v262_v19, 0.0  ;;  %v808_v19 = vld [vmem:[%s1524_s6 + $0x58] sm:$0xff] }
 0x113   :  { %v201_v22 = vpop.f32.mrf.mxu2 }
 0x114   :  { %v202_v23 = vadd.f32 %v201_v22, %v1335_v20  ;;  %302 = vmatmul.f32.vlgmr.msrb.gmra.mxu3 %v265_v21  ;;  %342 = vmatmul.f32.vlgmr.msra.gmra.mxu1 %v265_v21  ;;  %v221_v24 = vpop.f32.mrf.mxu3 }
 0x115   :  { %511 = vmatpush.msrb.mxu3 %v487_v27  ;;  %578 = vmatpush.msra.mxu1 %v808_v19  ;;  %v806_v27 = vld [vmem:[%s1524_s6 + $0x48] sm:$0xff] }
 0x116   :  { %v222_v25 = vadd.f32 %v221_v24, %v202_v23 }
 0x117   :  { %512 = vmatpush.msrb.mxu3 %v486_v28  ;;  %v805_v28 = vld [vmem:[%s1524_s6 + $0x40] sm:$0xff] }
 0x118   :  { %v264_v26 = vmax.f32 %v222_v25, 0.0 }
 0x119   :  { %513 = vmatpush.msrb.mxu3 %v485_v31 }
 0x11a   :  { %282 = vmatmul.f32.vlgmr.msrb.gmra.mxu2 %v264_v26  ;;  %322 = vmatmul.f32.vlgmr.msra.gmra.mxu0 %v264_v26  ;;  %v807_v26 = vld [vmem:[%s1524_s6 + $0x50] sm:$0xff] }
 0x11b   :  { %491 = vmatpush.msrb.mxu2 %v471_v29  ;;  %514 = vmatpush.msrb.mxu3 %v484_v34  ;;  %v812_v29 = vld [vmem:[%s1524_s6 + $0x78] sm:$0xff] }
 0x11c   :  { %551 = vmatpush.msra.mxu0 %v804_v16  ;;  %579 = vmatpush.msra.mxu1 %v807_v26 }
 0x11d   :  { %492 = vmatpush.msrb.mxu2 %v470_v30  ;;  %515 = vmatpush.msrb.mxu3 %v483_v36  ;;  %v834_v30 = vld [vmem:[%s1525_s7 + $0x1] ss:$0 sm:$0xff]  ;;  %v810_v36 = vld [vmem:[%s1524_s6 + $0x68] sm:$0xff] }
 0x11e   :  { %580 = vmatpush.msra.mxu1 %v806_v27 }
 0x11f   :  { %493 = vmatpush.msrb.mxu2 %v469_v33  ;;  %516 = vmatpush.msrb.mxu3 %v482_v38  ;;  %v433_v38 = vld [vmem:[%s1524_s6 + $0x18] sm:$0xff] }
 0x120   :  { %581 = vmatpush.msra.mxu1 %v805_v28 }
 0x121   :  { %494 = vmatpush.msrb.mxu2 %v468_v35  ;;  %517 = vmatpush.msrb.mxu3 %v481_v40  ;;  %v811_v35 = vld [vmem:[%s1524_s6 + $0x70] sm:$0xff] }
 0x123   :  { %495 = vmatpush.msrb.mxu2 %v467_v37  ;;  %518 = vmatpush.msrb.mxu3 %v480_v41  ;;  %v809_v37 = vld [vmem:[%s1524_s6 + $0x60] sm:$0xff] }
 0x125   :  { %496 = vmatpush.msrb.mxu2 %v466_v39  ;;  %519 = vmatpush.msrb.mxu3 %v479_v42  ;;  %v835_v39 = vld [vmem:[%s1525_s7 + $0x2] ss:$0 sm:$0xff] }
 0x127   :  { %497 = vmatpush.msrb.mxu2 %v465_v53  ;;  %520 = vmatpush.msrb.mxu3 %v478_v54 }
 0x129   :  { %498 = vmatpush.msrb.mxu2 %v464_v55  ;;  %521 = vmatpush.msrb.mxu3 %v477_v56 }
 0x12b   :  { %499 = vmatpush.msrb.mxu2 %v463_v57  ;;  %522 = vmatpush.msrb.mxu3 %v476_v58 }
 0x12d   :  { %500 = vmatpush.msrb.mxu2 %v462_v59  ;;  %523 = vmatpush.msrb.mxu3 %v475_v60  ;;  %v711_v59 = vld [vmem:[#allocation2] sm:$0x1]  ;;  %v922_v60 = vmov 0  }
 0x12e   :  { %832 = vset.pattern.permute.xlu0 %v922_v60 }
 0x12f   :  { %501 = vmatpush.msrb.mxu2 %v461_v61  ;;  %524 = vmatpush.msrb.mxu3 %v474_v62 }
 0x130   :  { %714 = vperm.xlu0 %832, %v711_v59  }
 0x131   :  { %502 = vmatpush.msrb.mxu2 %v460_v63  ;;  %525 = vmatpush.msrb.mxu3 %v473_v0  ;;  %v710_v0 = vld [vmem:[%s1526_s8] sm:$0x1]  ;;  %s924_s8 = smov [#allocation7]  }
 0x132   :  { %s782_s10 = sshll.u32 %s924_s8, 4  ;;  %s783_s10 = int_to_ptr.vmem [resolvable:$true] %s782_s10 }
 0x133   :  { %503 = vmatpush.msrb.mxu2 %v459_v1  ;;  %526 = vmatpush.msrb.mxu3 %v472_v2 }
 0x135   :  { %504 = vmatpush.msrb.mxu2 %v458_v3 }
 0x137   :  { %505 = vmatpush.msrb.mxu2 %v457_v4 }
 0x139   :  { %506 = vmatpush.msrb.mxu2 %v456_v5 }
 0x191   :  { %v343_v45 = vpop.f32.mrf.mxu1 }
 0x197   :  { %v323_v43 = vpop.f32.mrf.mxu0  ;;  %v303_v50 = vpop.f32.mrf.mxu3 }
 0x198   :  { %v324_v44 = vadd.f32 %v323_v43, %v1332_v15  ;;  %v432_v43 = vld [vmem:[%s1524_s6 + $0x10] sm:$0xff] }
 0x19a   :  { %v344_v46 = vadd.f32 %v343_v45, %v324_v44  ;;  %v431_v44 = vld [vmem:[%s1524_s6 + $0x8] sm:$0xff]  ;;  %v430_v45 = vld [vmem:[%s1524_s6] sm:$0xff] }
 0x19c   :  { %v347_v47 = vmax.f32 %v344_v46, 0.0  ;;  %v836_v46 = vld [vmem:[%s1525_s7 + $0x3] ss:$0 sm:$0xff] }
 0x19d   :  { %v283_v48 = vpop.f32.mrf.mxu2 }
 0x19e   :  { %v284_v49 = vadd.f32 %v283_v48, %v1335_v20  ;;  %384 = vmatmul.f32.vlgmr.msra.gmra.mxu3 %v347_v47  ;;  %424 = vmatmul.f32.vlgmr.msrb.gmra.mxu1 %v347_v47 }
 0x19f   :  { %629 = vmatpush.msrb.mxu1 %v433_v38 }
 0x1a0   :  { %v304_v51 = vadd.f32 %v303_v50, %v284_v49 }
 0x1a1   :  { %630 = vmatpush.msrb.mxu1 %v432_v43 }
 0x1a2   :  { %v346_v52 = vmax.f32 %v304_v51, 0.0  ;;  %v715_v1 = vpop.permute.xlu0 %714 }
 0x1a3   :  { %631 = vmatpush.msrb.mxu1 %v431_v44  ;;  %v717_v2 = vperm.slane %v715_v1, 0 }
 0x1a4   :  { %364 = vmatmul.f32.vlgmr.msra.gmra.mxu2 %v346_v52  ;;  %404 = vmatmul.f32.vlgmr.msrb.gmra.mxu0 %v346_v52 }
 0x1a5   :  { %632 = vmatpush.msrb.mxu1 %v430_v45 }
 0x21b   :  { %v425_v7 = vpop.f32.mrf.mxu1 }
 0x221   :  { %v405_v32 = vpop.f32.mrf.mxu0  ;;  %v385_v12 = vpop.f32.mrf.mxu3 }
 0x222   :  { %v406_v6 = vadd.f32 %v405_v32, %v1332_v15  ;;  %v803_v15 = vld [vmem:[%s1524_s6 + $0x30] sm:$0xff] }
 0x223   :  { %552 = vmatpush.msra.mxu0 %v803_v15 }
 0x224   :  { %v426_v8 = vadd.f32 %v425_v7, %v406_v6 }
 0x225   :  { %553 = vmatpush.msra.mxu0 %v802_v17 }
 0x226   :  { %v429_v9 = vmax.f32 %v426_v8, 0.0 }
 0x227   :  { %v365_v10 = vpop.f32.mrf.mxu2  ;;  %554 = vmatpush.msra.mxu0 %v801_v18 }
 0x228   :  { %v366_v11 = vadd.f32 %v365_v10, %v1335_v20  ;;  %527 = vmatmul.f32.vlgmr.msrb.gmra.mxu3 %v429_v9  ;;  %v833_v20 = vld [vmem:[%s1525_s7] ss:$0 sm:$0xff] }
 0x229   :  { %605 = vmatpush.msrb.mxu0 %v812_v29 }
 0x22a   :  { %v386_v13 = vadd.f32 %v385_v12, %v366_v11 }
 0x22b   :  { %606 = vmatpush.msrb.mxu0 %v811_v35 }
 0x22c   :  { %v428_v14 = vmax.f32 %v386_v13, 0.0 }
 0x22d   :  { %607 = vmatpush.msrb.mxu0 %v810_v36 }
 0x22e   :  { %507 = vmatmul.f32.vlgmr.msrb.gmra.mxu2 %v428_v14 }
 0x22f   :  { %608 = vmatpush.msrb.mxu0 %v809_v37 }
 0x2ab   :  { %v528_v23 = vpop.f32.mrf.mxu3 }
 0x2b1   :  { %v508_v21 = vpop.f32.mrf.mxu2 }
 0x2b2   :  { %v509_v22 = vadd.f32 %v833_v20, %v508_v21 }
 0x2b4   :  { %v529_v24 = vadd.f32 %v528_v23, %v509_v22 }
 0x2b6   :  { %v531_v25 = vmax.f32 %v529_v24, 0.0 }
 0x2b8   :  { %816 = vmatmul.msk.f32.vlgmr.msra.gmra.mxu0 %vm535_vm1, %v531_v25 }
 0x2b9   :  { %653 = vmatpush.msra.mxu0 %v804_v16 }
 0x2bb   :  { %654 = vmatpush.msra.mxu0 %v803_v15 }
 0x2bd   :  { %655 = vmatpush.msra.mxu0 %v802_v17 }
 0x2bf   :  { %656 = vmatpush.msra.mxu0 %v801_v18 }
 0x335   :  { %v556_v31 = vpop.f32.mrf.mxu0 }
 0x336   :  { %v557_v33 = vadd.f32 %v834_v30, %v556_v31 }
 0x338   :  { %v559_v34 = vmax.f32 %v557_v33, 0.0 }
 0x33a   :  { %817 = vmatmul.msk.f32.vlgmr.msra.gmra.mxu1 %vm535_vm1, %v559_v34 }
 0x33b   :  { %677 = vmatpush.msra.mxu1 %v808_v19 }
 0x33d   :  { %678 = vmatpush.msra.mxu1 %v807_v26 }
 0x33f   :  { %679 = vmatpush.msra.mxu1 %v806_v27 }
 0x341   :  { %680 = vmatpush.msra.mxu1 %v805_v28 }
 0x3b7   :  { %v583_v40 = vpop.f32.mrf.mxu1 }
 0x3b8   :  { %v584_v41 = vadd.f32 %v835_v39, %v583_v40 }
 0x3ba   :  { %v586_v42 = vmax.f32 %v584_v41, 0.0 }
 0x3bc   :  { %818 = vmatmul.msk.f32.vlgmr.msrb.gmra.mxu0 %vm535_vm1, %v586_v42 }
 0x3bd   :  { %701 = vmatpush.msrb.mxu0 %v812_v29 }
 0x3bf   :  { %702 = vmatpush.msrb.mxu0 %v811_v35 }
 0x3c1   :  { %703 = vmatpush.msrb.mxu0 %v810_v36 }
 0x3c3   :  { %704 = vmatpush.msrb.mxu0 %v809_v37 }
 0x439   :  { %v610_v47 = vpop.f32.mrf.mxu0 }
 0x43a   :  { %v611_v48 = vadd.f32 %v836_v46, %v610_v47 }
 0x43c   :  { %v613_v49 = vmax.f32 %v611_v48, 0.0 }
 0x43e   :  { %819 = vmatmul.msk.f32.vlgmr.msrb.gmra.mxu1 %vm535_vm1, %v613_v49 }
 0x4bb   :  { %v634_v50 = vpop.f32.mrf.mxu1 }
 0x4bc   :  { %v635_v51 = vadd.f32 %v833_v20, %v634_v50 }
 0x4be   :  { %v637_v52 = vmax.f32 %v635_v51, 0.0 }
 0x4c0   :  { %820 = vmatmul.msk.f32.vlgmr.msra.gmra.mxu0 %vm535_vm1, %v637_v52 }
 0x53d   :  { %v658_v53 = vpop.f32.mrf.mxu0 }
 0x53e   :  { %v659_v54 = vadd.f32 %v834_v30, %v658_v53 }
 0x540   :  { %v661_v55 = vmax.f32 %v659_v54, 0.0 }
 0x542   :  { %821 = vmatmul.msk.f32.vlgmr.msra.gmra.mxu1 %vm535_vm1, %v661_v55 }
 0x5bf   :  { %v682_v56 = vpop.f32.mrf.mxu1 }
 0x5c0   :  { %v683_v57 = vadd.f32 %v835_v39, %v682_v56 }
 0x5c2   :  { %v685_v58 = vmax.f32 %v683_v57, 0.0 }
 0x5c4   :  { %822 = vmatmul.msk.f32.vlgmr.msrb.gmra.mxu0 %vm535_vm1, %v685_v58 }
 0x641   :  { %v706_v61 = vpop.f32.mrf.mxu0 }
 0x642   :  { %v707_v62 = vadd.f32 %v836_v46, %v706_v61 }
 0x644   :  { %v709_v63 = vmax.f32 %v707_v62, 0.0 }
 0x646   :  { %823 = vmatpush.xpose.msk.msrb.mxu1 %vm535_vm1, %v709_v63 }
 0x649   :  { %824 = vmatmul.msk.f32.vlgmr.msrb.gmra.mxu1 %vm535_vm1, %v710_v0 }
 0x6c6   :  { %v741_v3 = vpop.f32.mrf.mxu1 }
 0x6c7   :  { %v742_v4 = vadd.f32 %v741_v3, %v717_v2 }
 0x6c9   :  { %v825_v5 = vmul.f32 -1.442695, %v742_v4  ;;  %745 = vst.msk [vmem:[#allocation6] sm:$0x1] %vm744_vm2, %v742_v4 }
 0x6ca   :  { %776 = dma.vmem_to_hbm [thread:$0]  %s772_s18, 16, %s774_s21, [#allocation5]  }
 0x6cb   :  { %837 = vpow2.f32 %v825_v5 }
 0x6d1   :  { %v838_v32 = vpop.eup %837 }
 0x6d2   :  { %v749_v6 = vadd.f32 1.0, %v838_v32 }
 0x6d4   :  { %839 = vrcp.f32 %v749_v6  ;;  %v761_v10 = vand.u32 2147483648, %v749_v6  ;;  %v759_v12 = vand.u32 2147483647, %v749_v6  ;;  %vm755_vm4 = vweird.f32 %v749_v6 }
 0x6d6   :  { %v762_v14 = vor.u32 1.1754944e-38, %v761_v10  ;;  %vm760_vm6 = vcmp.eq.f32.partialorder %v759_v12, 8.507059e+37 }
 0x6da   :  { %v840_v7 = vpop.eup %839 }
 0x6db   :  { %v751_v8 = vmul.f32 %v840_v7, %v749_v6  ;;  %vm756_vm3 = vweird.f32 %v840_v7 }
 0x6dc   :  { %vm757_vm5 = vmor %vm755_vm4, %vm756_vm3 }
 0x6dd   :  { %v752_v9 = vsub.f32 1.0, %v751_v8 }
 0x6df   :  { %v753_v11 = vmul.f32 %v840_v7, %v752_v9 }
 0x6e1   :  { %v754_v13 = vadd.f32 %v840_v7, %v753_v11 }
 0x6e3   :  { %v758_v16 = vsel %vm757_vm5, %v840_v7, %v754_v13 }
 0x6e4   :  { %v763_v15 = vsel %vm760_vm6, %v762_v14, %v758_v16 }
 0x6e5   :  { %765 = vst.msk [vmem:[#allocation7] sm:$0x1] %vm744_vm2, %v763_v15 }
 0x6e6   :  { %787 = dma.vmem_to_hbm [thread:$0]  %s783_s10, 16, %s785_s24, [#allocation8]  }
 0x6e7   :  { %915 = dma.done.wait [#allocation5], 16  }
 0x6e8   :  { %916 = vsyncadd [#allocation5], 4294967280 }
 0x6e9   :  { %917 = dma.done.wait [#allocation8], 16  }
 0x6ea   :  { %918 = vsyncadd [#allocation8], 4294967280 }
 0x6eb   :  { %796 = vsyncpa [#allocation4], 1 }
 0x6ec   :  { %797 = vsyncpa [#allocation5], 1 }
 0x6ed   :  { %798 = vsyncpa [#allocation8], 1 }

</bundles_post_ra>
